<compile_context>
chip_gen: v7x
topology: tpu7x:2x2x1
jax: 0.10.0
libtpu: 0.0.40
codegen_flags: <defaults>
</compile_context>

<pallas_src>
import functools

import jax
import jax.numpy as jnp
from jax import lax
from jax.experimental import pallas as pl
from jax.experimental.pallas import tpu as pltpu


def _ce_kernel(logits_ref, targets_ref, out_ref, acc_ref, *,
               n_rows, tile_n, tiles_per_group):
    # logits_ref : (tile_n, C) native dtype, VMEM
    # targets_ref: (tile_n, 1) int32, VMEM
    # out_ref    : (1, 1) f32 per-group partial sum (block of the (G,1) output)
    # acc_ref    : (1, 1) f32 VMEM scratch accumulator (persists across grid)
    g = pl.program_id(0)           # group (parallel axis)
    t = pl.program_id(1)           # tile within group (reduction axis)

    @pl.when(t == 0)
    def _():
        acc_ref[...] = jnp.zeros_like(acc_ref)

    x = logits_ref[...].astype(jnp.float32)          # (tile_n, C)
    tgt = targets_ref[...]                           # (tile_n, 1) int32
    tn, c = x.shape

    # Numerically stable logsumexp.
    m = jnp.max(x, axis=-1, keepdims=True)           # (tile_n, 1)
    s = x - m                                        # (tile_n, C)
    lse = jnp.log(jnp.sum(jnp.exp(s), axis=-1, keepdims=True))  # (tile_n, 1)

    # Gather the target-class (shifted) logit with a masked select.
    col = lax.broadcasted_iota(jnp.int32, (tn, c), 1)
    picked = jnp.sum(jnp.where(col == tgt, s, 0.0), axis=-1, keepdims=True)

    per_example = lse - picked                       # (tile_n, 1)

    # Mask rows beyond the true batch size (padded last tile).
    row0 = (g * tiles_per_group + t) * tile_n
    row = row0 + lax.broadcasted_iota(jnp.int32, (tn, 1), 0)
    per_example = jnp.where(row < n_rows, per_example, 0.0)

    acc_ref[...] += jnp.sum(per_example).reshape(1, 1)

    @pl.when(t == pl.num_programs(1) - 1)
    def _():
        out_ref[...] = acc_ref[...]


def _choose_tile_n(n, c, itemsize, tile_n):
    if tile_n is None:
        # Target ~4 MiB per logits buffer (double-buffered -> ~8 MiB), <=1024 rows.
        budget = 4 * 1024 * 1024
        tile_n = max(8, min(1024, budget // max(1, c * itemsize)))
    tile_n = int(min(tile_n, n))
    if tile_n < n:
        # Blocks smaller than the full dim must be a multiple of 8 sublanes.
        tile_n = max(8, (tile_n // 8) * 8)
    return max(1, tile_n)


def classification_loss(inputs, targets, *, tile_n=None, num_groups=None):
    """inputs: (N, C) float logits (any float dtype); targets: (N,) int class ids.

    Returns scalar float32 mean cross-entropy loss (matches nn.CrossEntropyLoss()).
    """
    n, c = inputs.shape
    itemsize = jnp.dtype(inputs.dtype).itemsize
    tgt = targets.astype(jnp.int32).reshape(n, 1)

    tile_n = _choose_tile_n(n, c, itemsize, tile_n)
    num_tiles = pl.cdiv(n, tile_n)

    # Split tiles across 2 groups (-> 2 TensorCores on v7x) when it divides evenly.
    if num_groups is None:
        num_groups = 2 if (num_tiles >= 4 and num_tiles % 2 == 0) else 1
    if num_tiles % num_groups != 0:
        num_groups = 1
    tiles_per_group = num_tiles // num_groups

    kernel = functools.partial(
        _ce_kernel, n_rows=n, tile_n=tile_n, tiles_per_group=tiles_per_group)

    # VMEM budget: double-buffered logits + targets tiles, plus tiny scratch/out.
    tile_bytes = tile_n * c * itemsize + tile_n * 4
    vmem_limit = int(min(32 * 1024 * 1024,
                         max(8 * 1024 * 1024, 3 * tile_bytes + 64 * 1024)))

    cost = pl.CostEstimate(
        flops=6 * n * c,
        transcendentals=n * (c + 1),
        bytes_accessed=n * c * itemsize + n * 4 + num_groups * 4,
    )

    partials = pl.pallas_call(
        kernel,
        out_shape=jax.ShapeDtypeStruct((num_groups, 1), jnp.float32),
        grid_spec=pltpu.PrefetchScalarGridSpec(
            num_scalar_prefetch=0,
            grid=(num_groups, tiles_per_group),
            in_specs=[
                pl.BlockSpec((tile_n, c),
                             lambda g, t: (g * tiles_per_group + t, 0)),
                pl.BlockSpec((tile_n, 1),
                             lambda g, t: (g * tiles_per_group + t, 0)),
            ],
            out_specs=pl.BlockSpec((1, 1), lambda g, t: (g, 0)),
            scratch_shapes=[pltpu.VMEM((1, 1), jnp.float32)],
        ),
        compiler_params=pltpu.CompilerParams(
            dimension_semantics=("parallel", "arbitrary"),
            vmem_limit_bytes=vmem_limit,
        ),
        cost_estimate=cost,
    )(inputs, tgt)

    # Final reduction over the (at most 2) per-group partial sums; divide by true N.
    return jnp.sum(partials) / jnp.float32(n)


class ClassificationLoss:
    """Drop-in mirror of the PyTorch module's forward."""

    def __call__(self, inputs, targets):
        return classification_loss(inputs, targets)


def _reference_ce(inputs, targets):
    x = inputs.astype(jnp.float32)
    return jnp.mean(
        jax.nn.logsumexp(x, axis=-1)
        - jnp.take_along_axis(x, targets[:, None].astype(jnp.int32), axis=-1)[:, 0]
    )


if __name__ == "__main__":
    key = jax.random.PRNGKey(0)
    k1, k2 = jax.random.split(key)

    # Small f32 case: N=12 with tile_n=8 exercises multi-tile accumulation and a
    # padded (masked) last tile.
    N, C = 12, 16
    inputs = jax.random.normal(k1, (N, C), dtype=jnp.float32)
    targets = jax.random.randint(k2, (N,), 0, C, dtype=jnp.int32)

    loss_fn = ClassificationLoss()
    loss = loss_fn(inputs, targets) if False else classification_loss(
        inputs, targets, tile_n=8)
    loss = jax.block_until_ready(loss)
    ref = _reference_ce(inputs, targets)
    assert jnp.allclose(loss, ref, atol=1e-5, rtol=1e-5), (loss, ref)

    # bf16 case exercising native-dtype input and the 2-group (megacore) split:
    # 64 rows / tile_n=16 -> 4 tiles -> grid (2, 2).
    N2, C2 = 64, 128
    x2 = jax.random.normal(k1, (N2, C2), dtype=jnp.float32).astype(jnp.bfloat16)
    t2 = jax.random.randint(k2, (N2,), 0, C2, dtype=jnp.int32)
    loss2 = jax.block_until_ready(classification_loss(x2, t2, tile_n=16))
    ref2 = _reference_ce(x2, t2)
    assert jnp.allclose(loss2, ref2, atol=2e-2, rtol=2e-2), (loss2, ref2)

    print("KERNEL_OK")
</pallas_src>

<mosaic_0001>
module attributes {stable_mosaic.version = 11 : i64} {
  func.func @_ce_kernel(%arg0: i32, %arg1: i32, %arg2: memref<8x16xf32, #tpu.memory_space<vmem>>, %arg3: memref<8x1xi32, #tpu.memory_space<vmem>>, %arg4: memref<1x1xf32, #tpu.memory_space<vmem>>, %arg5: memref<1x1xf32, #tpu.memory_space<vmem>>) attributes {dimension_semantics = [#tpu.dimension_semantics<parallel>, #tpu.dimension_semantics<arbitrary>], iteration_bounds = array<i64: 1, 2>, scalar_prefetch = 0 : i64, scratch_operands = 1 : i64, tpu.core_type = #tpu.core_type<tc>, window_params = [{transform_indices = @transform_0, window_bounds = array<i64: 8, 16>}, {transform_indices = @transform_1, window_bounds = array<i64: 8, 1>}, {transform_indices = @transform_2, window_bounds = array<i64: 1, 1>}]} {
    %c0_i32 = arith.constant 0 : i32
    %0 = arith.cmpi eq, %arg1, %c0_i32 : i32
    %1 = arith.extui %0 : i1 to i32
    %c0_i32_0 = arith.constant 0 : i32
    %2 = arith.cmpi ne, %1, %c0_i32_0 : i32
    scf.if %2 {
      %cst_14 = arith.constant 0.000000e+00 : f32
      %42 = vector.broadcast %cst_14 : f32 to vector<1x1xf32>
      %c0_15 = arith.constant 0 : index
      %c0_16 = arith.constant 0 : index
      %43 = vector.load %arg5[%c0_15, %c0_16] : memref<1x1xf32, #tpu.memory_space<vmem>>, vector<1x1xf32>
      tpu.vector_store %arg5[%c0_15, %c0_16], %42 {strides = array<i32>} : memref<1x1xf32, #tpu.memory_space<vmem>>, vector<1x1xf32>,
    } else {
    }
    %c0 = arith.constant 0 : index
    %c0_1 = arith.constant 0 : index
    %3 = vector.load %arg2[%c0, %c0_1] : memref<8x16xf32, #tpu.memory_space<vmem>>, vector<8x16xf32>
    %c0_2 = arith.constant 0 : index
    %c0_3 = arith.constant 0 : index
    %4 = vector.load %arg3[%c0_2, %c0_3] : memref<8x1xi32, #tpu.memory_space<vmem>>, vector<8x1xi32>
    %cst = arith.constant dense<0xFF800000> : vector<8xf32>
    %5 = vector.multi_reduction <maximumf>, %3, %cst [1] : vector<8x16xf32> to vector<8xf32>
    %6 = vector.shape_cast %5 : vector<8xf32> to vector<8x1xf32>
    %7 = vector.broadcast %6 : vector<8x1xf32> to vector<8x16xf32>
    %8 = arith.subf %3, %7 : vector<8x16xf32>
    %9 = math.exp %8 : vector<8x16xf32>
    %cst_4 = arith.constant dense<0.000000e+00> : vector<8xf32>
    %10 = vector.multi_reduction <add>, %9, %cst_4 [1] : vector<8x16xf32> to vector<8xf32>
    %11 = vector.shape_cast %10 : vector<8xf32> to vector<8x1xf32>
    %12 = math.log %11 : vector<8x1xf32>
    %13 = tpu.iota {dimensions = array<i32: 1>} : vector<8x16xi32>
    %14 = vector.broadcast %4 : vector<8x1xi32> to vector<8x16xi32>
    %15 = arith.cmpi eq, %13, %14 : vector<8x16xi32>
    %cst_5 = arith.constant 0.000000e+00 : f32
    %16 = vector.broadcast %cst_5 : f32 to vector<8x16xf32>
    %17 = arith.select %15, %8, %16 : vector<8x16xi1>, vector<8x16xf32>
    %cst_6 = arith.constant dense<0.000000e+00> : vector<8xf32>
    %18 = vector.multi_reduction <add>, %17, %cst_6 [1] : vector<8x16xf32> to vector<8xf32>
    %19 = vector.shape_cast %18 : vector<8xf32> to vector<8x1xf32>
    %20 = arith.subf %12, %19 : vector<8x1xf32>
    %c2_i32 = arith.constant 2 : i32
    %21 = arith.muli %arg0, %c2_i32 : i32
    %22 = arith.addi %21, %arg1 : i32
    %c8_i32 = arith.constant 8 : i32
    %23 = arith.muli %22, %c8_i32 : i32
    %24 = tpu.iota {dimensions = array<i32: 0>} : vector<8x1xi32>
    %25 = vector.broadcast %23 : i32 to vector<8x1xi32>
    %26 = arith.addi %25, %24 : vector<8x1xi32>
    %c12_i32 = arith.constant 12 : i32
    %27 = vector.broadcast %c12_i32 : i32 to vector<8x1xi32>
    %28 = arith.cmpi slt, %26, %27 : vector<8x1xi32>
    %cst_7 = arith.constant 0.000000e+00 : f32
    %29 = vector.broadcast %cst_7 : f32 to vector<8x1xf32>
    %30 = arith.select %28, %20, %29 : vector<8x1xi1>, vector<8x1xf32>
    %c0_8 = arith.constant 0 : index
    %c0_9 = arith.constant 0 : index
    %31 = vector.load %arg5[%c0_8, %c0_9] : memref<1x1xf32, #tpu.memory_space<vmem>>, vector<1x1xf32>
    %32 = vector.shape_cast %30 : vector<8x1xf32> to vector<1x8x1xf32>
    %cst_10 = arith.constant dense<0.000000e+00> : vector<1xf32>
    %33 = vector.multi_reduction <add>, %32, %cst_10 [1, 2] : vector<1x8x1xf32> to vector<1xf32>
    %34 = vector.shape_cast %33 : vector<1xf32> to vector<1x1x1xf32>
    %35 = vector.extract %34[0, 0, 0] : f32 from vector<1x1x1xf32>
    %36 = vector.broadcast %35 : f32 to vector<1x1xf32>
    %37 = arith.addf %31, %36 : vector<1x1xf32>
    %c0_11 = arith.constant 0 : index
    %c0_12 = arith.constant 0 : index
    %38 = vector.load %arg5[%c0_11, %c0_12] : memref<1x1xf32, #tpu.memory_space<vmem>>, vector<1x1xf32>
    tpu.vector_store %arg5[%c0_11, %c0_12], %37 {strides = array<i32>} : memref<1x1xf32, #tpu.memory_space<vmem>>, vector<1x1xf32>,
    %c1_i32 = arith.constant 1 : i32
    %39 = arith.cmpi eq, %arg1, %c1_i32 : i32
    %40 = arith.extui %39 : i1 to i32
    %c0_i32_13 = arith.constant 0 : i32
    %41 = arith.cmpi ne, %40, %c0_i32_13 : i32
    scf.if %41 {
      %c0_14 = arith.constant 0 : index
      %c0_15 = arith.constant 0 : index
      %42 = vector.load %arg5[%c0_14, %c0_15] : memref<1x1xf32, #tpu.memory_space<vmem>>, vector<1x1xf32>
      %c0_16 = arith.constant 0 : index
      %c0_17 = arith.constant 0 : index
      %43 = vector.load %arg4[%c0_16, %c0_17] : memref<1x1xf32, #tpu.memory_space<vmem>>, vector<1x1xf32>
      tpu.vector_store %arg4[%c0_16, %c0_17], %42 {strides = array<i32>} : memref<1x1xf32, #tpu.memory_space<vmem>>, vector<1x1xf32>,
    } else {
    }
    return
  }
  func.func @transform_0(%arg0: i32, %arg1: i32) -> (i32, i32) {
    %c2_i32 = arith.constant 2 : i32
    %0 = arith.muli %arg0, %c2_i32 : i32
    %1 = arith.addi %0, %arg1 : i32
    %c0_i32 = arith.constant 0 : i32
    %c0_i32_0 = arith.constant 0 : i32
    return %1, %c0_i32 : i32, i32
  }
  func.func @transform_1(%arg0: i32, %arg1: i32) -> (i32, i32) {
    %c2_i32 = arith.constant 2 : i32
    %0 = arith.muli %arg0, %c2_i32 : i32
    %1 = arith.addi %0, %arg1 : i32
    %c0_i32 = arith.constant 0 : i32
    %c0_i32_0 = arith.constant 0 : i32
    return %1, %c0_i32 : i32, i32
  }
  func.func @transform_2(%arg0: i32, %arg1: i32) -> (i32, i32) {
    %c0_i32 = arith.constant 0 : i32
    %c0_i32_0 = arith.constant 0 : i32
    return %arg0, %c0_i32 : i32, i32
  }
}

</mosaic_0001>

<bundles_post_ra>
// kernel: tpu_custom_call.1
= control target key start
LH: loop header
LB: loop body
LE: loop exit
PB: predicated region body
PF: predicated region fallthrough
CT: control target
= control target key end

     0   :  { %7 = vsyncpa [#allocation4], 0  ;;  %s447_s9 = smov 0   ;;  %s449_s10 = smov 0   ;;  %s519_s0 = inlined_call_operand.vmem [shape: f32[12,16], index: 0, kind: input, shape index: {}]   ;;  %s520_s1 = inlined_call_operand.vmem [shape: s32[12,1], index: 1, kind: input, shape index: {}]   ;;  %s521_s2 = inlined_call_operand.hbm [shape: f32[1,1], index: 2, kind: output, shape index: {}]  }
   0x1   :  { %s451_s11 = smov 0  }
   0x2 LB: > { %s322_s12 = sadd.s32 4294967295, %s427_s11   ;;  %s22_s13 = sadd.s32 1, %s423_s10  ;;  %s427_s11 = sphi %s451_s11, %s13_s11   ;;  %s423_s10 = sphi %s449_s10, %s524_s10   ;;  %s419_s9 = sphi %s447_s9, %s523_s9  }
   0x3   : > { %p23_p0 = scmp.ge.s32.totalorder %s22_s13, 2  ;;  %p325_p1 = scmp.ge.s32.totalorder %s427_s11, 1 }
   0x4   : > { %p149_p2 = scmp.lt.s32.totalorder %s427_s11, 3 }
   0x5   : > { %s526_s13 = smov (%p23_p0, %s22_s13), 0 }
   0x6   : > { %p150_p3 = pnand %p325_p1, %p149_p2 }
   0x7   : > { %p175_p4 = scmp.lt.s32.totalorder (!%p150_p3), %s419_s9, 1  ;;  %p328_p5 = scmp.ne.s32.totalorder (!%p150_p3), %s419_s9, 0 }
   0x8   : > { %153 = sbr.rel (%p150_p3) target bundleno = 583 (0x247), region = 28 }
   0xf   : > { %s176_s14 = scalar_select %p175_p4, %s419_s9, 1 }
  0x10   : > { %192 = sbr.rel (%p328_p5) target bundleno = 23 (0x17), region = 32  ;;  %vm193_vm0 = vcmask (!%p328_p5), 0   ;;  %v429_v0 = vmov (!%p328_p5), 0.0  }
  0x11   : > { %s326_s15 = sshll.u32 %s176_s14, 3  ;;  %194 = vst.msk [vmem:[#allocation2] sm:$0x1] (!%p328_p5), %vm193_vm0, %v429_v0 }
  0x12   : > { %s178_s18 = scalar_lea.vmem %s519_s0, %s326_s15  ;;  %s186_s21 = scalar_lea.vmem %s520_s1, %s326_s15 }
  0x17 PF: > { %v195_v1 = vld [vmem:[%s178_s18] sm:$0xff]  ;;  %vm197_vm1 = vcmask 130048   ;;  %v430_v3 = vmov 0   ;;  %v209_v8 = vlaneseq  ;;  %s329_s22 = sshll.u32 %s419_s9, 3  ;;  %vm230_vm4 = vcmask 7168   ;;  %p330_p6 = scmp.ne.s32.totalorder %s419_s9, 1 }
  0x18   : > { %v198_v2 = vsel %vm197_vm1, %v195_v1, -inf  ;;  %370 = vset.pattern.permute.xlu0 %v430_v3  ;;  %v196_v4 = vld [vmem:[%s186_s21] sm:$0xff]  ;;  %v225_v17 = vstv %s329_s22  ;;  %vm243_vm5 = vcmask 0  }
  0x19   : > { %199 = vmax.xlane.f32.xlu0 %v198_v2  ;;  %v210_v9 = vand.u32 127, %v209_v8  ;;  %v224_v16 = vshrl.u32 %v209_v8, 7  ;;  %v229_v32 = vld [vmem:[#allocation2] sm:$0x1] }
  0x1b   : > { %v226_v18 = vadd.s32 %v225_v17, %v224_v16 }
  0x1d   : > { %vm227_vm3 = vcmp.lt.s32.totalorder %v226_v18, 12 }
  0x2f   : > { %212 = vperm.xlu0 %370, %v196_v4  }
  0xa6   : > { %v200_v5 = vpop.xlane.xlu0 %199 }
  0xa7   : > { %v201_v6 = vsub.f32 %v195_v1, %v200_v5 }
  0xa9   : > { %v202_v7 = vmul.f32 1.442695, %v201_v6 }
  0xab   : > { %371 = vpow2.f32 %v202_v7 }
  0xae   : > { %v213_v10 = vpop.permute.xlu0 %212 }
  0xaf   : > { %vm214_vm2 = vcmp.eq.s32.totalorder %v210_v9, %v213_v10 }
  0xb0   : > { %v215_v13 = vsel %vm214_vm2, %v201_v6, 0.0 }
  0xb1   : > { %v216_v14 = vsel %vm197_vm1, %v215_v13, 0.0 }
  0xb5   : > { %v372_v11 = vpop.eup %371 }
  0xb6   : > { %v204_v12 = vsel %vm197_vm1, %v372_v11, 0.0 }
  0xb7   : > { %205 = vadd.xlane.f32.xlu1 %v204_v12 }
  0xbb   : > { %217 = vadd.xlane.f32.xlu1 %v216_v14 }
 0x144   : > { %v206_v15 = vpop.xlane.xlu1 %205 }
 0x145   : > { %373 = vlog2.f32 %v206_v15 }
 0x148   : > { %v218_v21 = vpop.xlane.xlu1 %217 }
 0x14f   : > { %v374_v19 = vpop.eup %373 }
 0x150   : > { %v208_v20 = vmul.f32 0.6931472, %v374_v19 }
 0x152   : > { %v219_v22 = vsub.f32 %v208_v20, %v218_v21 }
 0x154   : > { %v228_v23 = vsel %vm227_vm3, %v219_v22, 0.0 }
 0x155   : > { %v231_v24 = vsel %vm230_vm4, %v228_v23, 0.0 }
 0x156   : > { %232 = vadd.xlane.f32.xlu1 %v231_v24 }
 0x1e3   : > { %v233_v25 = vpop.xlane.xlu1 %232 }
 0x1e4   : > { %v234_v26 = vrot.slane %v233_v25, 4 }
 0x1e6   : > { %v235_v27 = vadd.f32 %v234_v26, %v233_v25 }
 0x1e8   : > { %v236_v28 = vrot.slane %v235_v27, 2 }
 0x1ea   : > { %v237_v29 = vadd.f32 %v236_v28, %v235_v27 }
 0x1ec   : > { %v238_v30 = vrot.slane %v237_v29, 1 }
 0x1ee   : > { %v239_v31 = vadd.f32 %v238_v30, %v237_v29 }
 0x1f0   : > { %335 = vpush %v239_v31 }
 0x21f   : > { %248 = sbr.rel (%p330_p6) target bundleno = 558 (0x22e), region = 36 }
 0x221   : > { %s336_s23 = spop %335 }
 0x222   : > { %v241_v33 = vstv %s336_s23 }
 0x223   : > { %v242_v34 = vadd.f32 %v241_v33, %v229_v32 }
 0x225   : > { %244 = vst.msk [vmem:[#allocation2] sm:$0x1] %vm243_vm5, %v242_v34 }
 0x22c   : > { %v249_v35 = vld [vmem:[#allocation2] sm:$0x1] }
 0x22d   : > { %250 = vst.msk [vmem:[#allocation3] sm:$0x1] %vm243_vm5, %v249_v35 }
 0x22e PF: > { %p484_p7 = scmp.eq.s32.totalorder %s322_s12, 1  ;;  %s431_s25 = smov [#allocation3]  }
 0x22f   : > { %s260_s26 = sshll.u32 %s431_s25, 4  ;;  %s261_s26 = int_to_ptr.vmem [resolvable:$true] %s260_s26 }
 0x230   : > { %s375_s27 = scalar_lea.vmem %s261_s26, 16  ;;  %s381_s28 = scalar_lea.vmem %s261_s26, 32 }
 0x231   : > { %p376_p8 = scmp.ne.s32.totalorder %s261_s26, %s375_s27  ;;  %p382_p11 = scmp.lt.s32.totalorder %s261_s26, %s261_s26 }
 0x232   : > { %p383_p12 = scmp.lt.s32.totalorder %s381_s28, %s375_s27 }
 0x233   : > { %p377_p9 = pnand %p376_p8, %p484_p7 }
 0x234   : > { %p384_p13 = por %p383_p12, %p382_p11 }
 0x235   : > { %p378_p10 = pneg %p377_p9 }
 0x237   : > { %p385_p0 = pnand %p384_p13, %p378_p10 }
 0x239   : > { %388 = shalt.err (!%p385_p0)
}
 0x23a   : > { %s389_s3 = scalar_lea.hbm %s521_s2, 16 }
 0x23b   : > { %p390_p1 = scmp.ne.s32.totalorder %s521_s2, %s389_s3  ;;  %p395_p4 = scmp.lt.u32.totalorder %s389_s3, %s521_s2 }
 0x23d   : > { %p391_p2 = pnand %p390_p1, %p484_p7 }
 0x23f   : > { %p392_p3 = pneg %p391_p2 }
 0x241   : > { %p397_p5 = pnand %p395_p4, %p392_p3 }
 0x243   : > { %400 = shalt.err (!%p397_p5)
}
 0x244   : > { %338 = dma.vmem_to_hbm [thread:$0]  (%p484_p7), %s261_s26, 16, %s521_s2, [#allocation4]  }
 0x245   : > { %414 = dma.done.wait (%p484_p7), [#allocation4], 16  }
 0x246   : > { %416 = vsyncadd (%p484_p7), [#allocation4], 4294967280 }
 0x247 PF: > { %s13_s11 = sadd.s32 1, %s427_s11   ;;  %s523_s9 = smov %s423_s10 }
 0x248   : > { %p10_p6 = scmp.ge.s32.totalorder %s13_s11, 4   ;;  %s524_s10 = smov %s526_s13 }
 0x24a   :  { %12 = sbr.rel (!%p10_p6) target bundleno = 2 (0x2), region = 67 }
 0x251   :  { %273 = vsyncpa [#allocation4], 1 }
 0x252   :  { %275 = vsyncpa [#allocation4 + $0x1], 1 }

</bundles_post_ra>
